<compile_context>
chip_gen: v5e
topology: v5e:2x2
jax: 0.10.0
libtpu: 0.0.40
codegen_flags: <defaults>
</compile_context>

<pallas_src>
import functools
import math

import jax
import jax.numpy as jnp
from jax import lax
from jax.experimental import pallas as pl
from jax.experimental.pallas import tpu as pltpu

_VMEM_LIMIT = 64 * 1024 * 1024  # above v5e/v6e scoped defaults, <= v7x physical


def _round_up(n, m):
    return -(-n // m) * m


# ----------------------------------------------------------------------------
# in-kernel math helpers (f32)
# ----------------------------------------------------------------------------
def _layernorm(x, gamma, beta, eps=1e-5):
    x = x.astype(jnp.float32)
    mu = jnp.mean(x, axis=-1, keepdims=True)
    xc = x - mu
    var = jnp.mean(xc * xc, axis=-1, keepdims=True)
    inv = lax.rsqrt(var + eps)
    return xc * inv * gamma + beta


def _gelu_exact(x):
    # matches torch.nn.GELU() default (erf-based)
    return 0.5 * x * (1.0 + lax.erf(x * (1.0 / math.sqrt(2.0))))


# ----------------------------------------------------------------------------
# Pallas kernels
# ----------------------------------------------------------------------------
def ln_qkv_kernel(x_ref, g_ref, b_ref, w_ref, bias_ref, o_ref):
    """LN1(x) @ W_qkv + b on a (tr, C) row tile.  bf16 MXU, f32 accumulation."""
    h = _layernorm(x_ref[...], g_ref[...], b_ref[...])
    acc = jnp.dot(h.astype(jnp.bfloat16), w_ref[...],
                  preferred_element_type=jnp.float32)
    o_ref[...] = (acc + bias_ref[...]).astype(o_ref.dtype)


def flash_attn_kernel(q_ref, k_ref, v_ref, o_ref, m_sc, l_sc, acc_sc,
                      *, tq, tk, scale):
    """Causal flash attention, grid = (B*H, q tiles, kv tiles), online softmax."""
    qi = pl.program_id(1)
    ki = pl.program_id(2)
    q_lo = qi * tq
    k_lo = ki * tk

    @pl.when(ki == 0)
    def _():
        m_sc[...] = jnp.full_like(m_sc, -jnp.inf)
        l_sc[...] = jnp.zeros_like(l_sc)
        acc_sc[...] = jnp.zeros_like(acc_sc)

    def attend(apply_mask):
        q = q_ref[...] * scale                       # fold 1/sqrt(hd) into q tile
        k = k_ref[...]
        v = v_ref[...]
        s = lax.dot_general(q, k, (((1,), (1,)), ((), ())),
                            preferred_element_type=jnp.float32)   # (tq, tk)
        if apply_mask:                               # only diagonal-straddling blocks
            q_pos = q_lo + lax.broadcasted_iota(jnp.int32, (tq, tk), 0)
            k_pos = k_lo + lax.broadcasted_iota(jnp.int32, (tq, tk), 1)
            s = jnp.where(k_pos <= q_pos, s, -1e30)
        m_prev = m_sc[...]
        m_new = jnp.maximum(m_prev, s.max(axis=-1, keepdims=True))
        alpha = jnp.exp(m_prev - m_new)
        p = jnp.exp(s - m_new)
        l_sc[...] = alpha * l_sc[...] + p.sum(axis=-1, keepdims=True)
        acc_sc[...] = alpha * acc_sc[...] + jnp.dot(
            p.astype(v.dtype), v, preferred_element_type=jnp.float32)
        m_sc[...] = m_new

    # fully-below-diagonal blocks: no mask math at all
    @pl.when(k_lo + (tk - 1) <= q_lo)
    def _():
        attend(False)

    # diagonal-straddling blocks: masked
    @pl.when(jnp.logical_and(k_lo + (tk - 1) > q_lo, k_lo <= q_lo + (tq - 1)))
    def _():
        attend(True)

    @pl.when(ki == pl.num_programs(2) - 1)
    def _():
        # NOTE: relies on the ki==0 block always containing >=1 unmasked score
        # (true for causal full-prefill).  approx reciprocal ~1e-3 rel err.
        inv_l = pl.reciprocal(l_sc[...], approx=True)
        o_ref[...] = (acc_sc[...] * inv_l).astype(o_ref.dtype)


def proj_mlp_kernel(x_ref, y_ref,
                    w_ao, b_ao, ln2_g, ln2_b,
                    w_fc, b_fc, w_pr, b_pr,
                    o_ref, x1_sc, h_sc, acc_sc):
    """Fused: x + attn_proj(y); LN2; GELU MLP (Fd-tiled reduction); residual."""
    fi = pl.program_id(1)

    @pl.when(fi == 0)
    def _():
        attn_out = jnp.dot(y_ref[...], w_ao[...],
                           preferred_element_type=jnp.float32) + b_ao[...]
        x1 = x_ref[...].astype(jnp.float32) + attn_out
        x1_sc[...] = x1
        h_sc[...] = _layernorm(x1, ln2_g[...], ln2_b[...]).astype(jnp.bfloat16)
        acc_sc[...] = jnp.zeros_like(acc_sc)

    f = jnp.dot(h_sc[...], w_fc[...], preferred_element_type=jnp.float32) + b_fc[...]
    f = _gelu_exact(f)
    acc_sc[...] += jnp.dot(f.astype(jnp.bfloat16), w_pr[...],
                           preferred_element_type=jnp.float32)

    @pl.when(fi == pl.num_programs(1) - 1)
    def _():
        o_ref[...] = (x1_sc[...] + acc_sc[...] + b_pr[...]).astype(o_ref.dtype)


def lm_head_kernel(x_ref, g_ref, b_ref, w_ref, o_ref):
    """ln_f(last-token x) @ wte^T, tiled over (padded) vocab."""
    h = _layernorm(x_ref[...], g_ref[...], b_ref[...])
    o_ref[...] = jnp.dot(h.astype(jnp.bfloat16), w_ref[...],
                         preferred_element_type=jnp.float32)


# ----------------------------------------------------------------------------
# tiling helpers
# ----------------------------------------------------------------------------
def _row_tiling(R, target=256):
    """Row tile (multiple of 8, <= target) and padded row count (multiple of tile).
    Ensures >=2 grid steps when there is enough work (v7x megacore)."""
    tr = min(target, _round_up(R, 8))
    if R > 8 and _round_up(R, tr) // tr < 2:
        tr = _round_up(_round_up(R, 2) // 2, 8)
    return tr, _round_up(R, tr)


def _attn_seq_tile(seq_len):
    # 256-wide tiles feed the 256x256 MXU on v6e/v7x; keep 128 on v5e.
    try:
        kind = jax.devices()[0].device_kind.lower()
    except Exception:
        kind = ""
    target = 128 if "v5" in kind else 256
    if seq_len <= target:
        return seq_len
    for t in (target, 128, 64, 32, 16, 8):
        if seq_len % t == 0:
            return t
    return seq_len  # TODO(synk): pad/mask ragged sequence lengths instead


def _fd_tile(fd, target=1024):
    if fd <= target:
        return fd
    for t in (target, 512, 256, 128):
        if fd % t == 0:
            return t
    return fd


def _lm_head_tiling(V, target=2048):
    tv = min(target, _round_up(V, 128))
    return tv, _round_up(V, tv)


# ----------------------------------------------------------------------------
# Pallas wrappers
# ----------------------------------------------------------------------------
def run_ln_qkv(x2d, gamma, beta, w, bias, tr):
    R, C = x2d.shape
    O = w.shape[1]
    return pl.pallas_call(
        ln_qkv_kernel,
        out_shape=jax.ShapeDtypeStruct((R, O), jnp.bfloat16),
        grid=(R // tr,),
        in_specs=[
            pl.BlockSpec((tr, C), lambda i: (i, 0)),
            pl.BlockSpec((1, C), lambda i: (0, 0)),
            pl.BlockSpec((1, C), lambda i: (0, 0)),
            pl.BlockSpec((C, O), lambda i: (0, 0)),   # weight stays VMEM-resident
            pl.BlockSpec((1, O), lambda i: (0, 0)),
        ],
        out_specs=pl.BlockSpec((tr, O), lambda i: (i, 0)),
        compiler_params=pltpu.CompilerParams(
            dimension_semantics=("parallel",),
            vmem_limit_bytes=_VMEM_LIMIT),
    )(x2d, gamma, beta, w, bias)


def run_flash_attention(q, k, v):
    BH, T, hd = q.shape
    tile = _attn_seq_tile(T)
    tq = tk = tile
    nq, nk = T // tq, T // tk
    scale = 1.0 / math.sqrt(hd)
    kernel = functools.partial(flash_attn_kernel, tq=tq, tk=tk, scale=scale)

    def kv_block(bh, qi, ki):
        # clamp above-diagonal kv blocks to the causal boundary -> no DMA for them
        return (bh, jnp.minimum(ki, (qi * tq + tq - 1) // tk), 0)

    return pl.pallas_call(
        kernel,
        out_shape=jax.ShapeDtypeStruct((BH, T, hd), jnp.bfloat16),
        grid=(BH, nq, nk),
        in_specs=[
            pl.BlockSpec((None, tq, hd), lambda bh, qi, ki: (bh, qi, 0)),
            pl.BlockSpec((None, tk, hd), kv_block),
            pl.BlockSpec((None, tk, hd), kv_block),
        ],
        out_specs=pl.BlockSpec((None, tq, hd), lambda bh, qi, ki: (bh, qi, 0)),
        scratch_shapes=[
            pltpu.VMEM((tq, 1), jnp.float32),     # running max
            pltpu.VMEM((tq, 1), jnp.float32),     # running denom
            pltpu.VMEM((tq, hd), jnp.float32),    # output accumulator
        ],
        compiler_params=pltpu.CompilerParams(
            dimension_semantics=("parallel", "parallel", "arbitrary")),
    )(q, k, v)


def run_proj_mlp(x2d, y2d, w_ao, b_ao, ln2_g, ln2_b, w_fc, b_fc, w_pr, b_pr, tr):
    R, C = x2d.shape
    Hq = y2d.shape[1]
    Fd = w_fc.shape[1]
    tfd = _fd_tile(Fd)
    return pl.pallas_call(
        proj_mlp_kernel,
        out_shape=jax.ShapeDtypeStruct((R, C), jnp.bfloat16),
        grid=(R // tr, Fd // tfd),
        in_specs=[
            pl.BlockSpec((tr, C), lambda i, f: (i, 0)),
            pl.BlockSpec((tr, Hq), lambda i, f: (i, 0)),
            pl.BlockSpec((Hq, C), lambda i, f: (0, 0)),
            pl.BlockSpec((1, C), lambda i, f: (0, 0)),
            pl.BlockSpec((1, C), lambda i, f: (0, 0)),
            pl.BlockSpec((1, C), lambda i, f: (0, 0)),
            pl.BlockSpec((C, tfd), lambda i, f: (0, f)),   # Fd-tiled streaming weights
            pl.BlockSpec((1, tfd), lambda i, f: (0, f)),
            pl.BlockSpec((tfd, C), lambda i, f: (f, 0)),
            pl.BlockSpec((1, C), lambda i, f: (0, 0)),
        ],
        out_specs=pl.BlockSpec((tr, C), lambda i, f: (i, 0)),
        scratch_shapes=[
            pltpu.VMEM((tr, C), jnp.float32),    # x1 = x + attn_proj (residual)
            pltpu.VMEM((tr, C), jnp.bfloat16),   # LN2 activations
            pltpu.VMEM((tr, C), jnp.float32),    # MLP accumulator
        ],
        compiler_params=pltpu.CompilerParams(
            dimension_semantics=("parallel", "arbitrary"),
            vmem_limit_bytes=_VMEM_LIMIT),
    )(x2d, y2d, w_ao, b_ao, ln2_g, ln2_b, w_fc, b_fc, w_pr, b_pr)


def run_lm_head(x_last, lnf_w, lnf_b, wte_t_pad, tv):
    B, C = x_last.shape
    Vp = wte_t_pad.shape[1]
    return pl.pallas_call(
        lm_head_kernel,
        out_shape=jax.ShapeDtypeStruct((B, Vp), jnp.float32),
        grid=(Vp // tv,),
        in_specs=[
            pl.BlockSpec((B, C), lambda j: (0, 0)),
            pl.BlockSpec((1, C), lambda j: (0, 0)),
            pl.BlockSpec((1, C), lambda j: (0, 0)),
            pl.BlockSpec((C, tv), lambda j: (0, j)),   # lane-dense vocab-tiled weight
        ],
        out_specs=pl.BlockSpec((B, tv), lambda j: (0, j)),
        compiler_params=pltpu.CompilerParams(
            dimension_semantics=("parallel",),
            vmem_limit_bytes=_VMEM_LIMIT),
    )(x_last, lnf_w, lnf_b, wte_t_pad)


# ----------------------------------------------------------------------------
# parameter init (deterministic, mirrors GPT._init_weights shapes/stds)
#   linear weights pre-transposed to (in, out) and stored bf16; tied lm_head
#   weight transposed AND vocab-padded ONCE at init.
# ----------------------------------------------------------------------------
def init_params(key, cfg):
    C = cfg['n_embd']
    Hq = cfg['head_size_qkv']
    Fd = cfg['ffw_dim']
    V = cfg['vocab_size']
    BS = cfg['block_size']
    L = cfg['n_layer']
    std = 0.02
    proj_std = 0.02 / math.sqrt(2 * L)
    _, V_pad = _lm_head_tiling(V)

    keys = jax.random.split(key, 2 + 4 * L)
    wte = std * jax.random.normal(keys[0], (V, C), jnp.float32)
    params = {
        'wte': wte,                                                    # (V, C) f32, gather
        'wte_t_pad': jnp.pad(wte.T.astype(jnp.bfloat16),
                             ((0, 0), (0, V_pad - V))),                # (C, V_pad) bf16
        'wpe': std * jax.random.normal(keys[1], (BS, C), jnp.float32),
        'lnf_w': jnp.ones((1, C), jnp.float32),
        'lnf_b': jnp.zeros((1, C), jnp.float32),
        'layers': [],
    }
    for l in range(L):
        k0, k1, k2, k3 = keys[2 + 4 * l: 2 + 4 * (l + 1)]
        layer = (
            jnp.ones((1, C), jnp.float32),                                           # ln1_w
            jnp.zeros((1, C), jnp.float32),                                          # ln1_b
            (std * jax.random.normal(k0, (C, 3 * Hq), jnp.float32)).astype(jnp.bfloat16),   # w_qkv
            jnp.zeros((1, 3 * Hq), jnp.float32),                                     # b_qkv
            (proj_std * jax.random.normal(k1, (Hq, C), jnp.float32)).astype(jnp.bfloat16),  # w_attn_proj
            jnp.zeros((1, C), jnp.float32),                                          # b_attn_proj
            jnp.ones((1, C), jnp.float32),                                           # ln2_w
            jnp.zeros((1, C), jnp.float32),                                          # ln2_b
            (std * jax.random.normal(k2, (C, Fd), jnp.float32)).astype(jnp.bfloat16),       # w_fc
            jnp.zeros((1, Fd), jnp.float32),                                         # b_fc
            (proj_std * jax.random.normal(k3, (Fd, C), jnp.float32)).astype(jnp.bfloat16),  # w_mlp_proj
            jnp.zeros((1, C), jnp.float32),                                          # b_mlp_proj
        )
        params['layers'].append(layer)
    return params


# ----------------------------------------------------------------------------
# full forward (targets=None branch of GPT.forward): returns (B, 1, vocab)
# ----------------------------------------------------------------------------
def gpt_forward_pallas(idx, params, cfg):
    B, T = idx.shape
    C = cfg['n_embd']
    H = cfg['n_head']
    Hq = cfg['head_size_qkv']
    hd = Hq // H
    V = cfg['vocab_size']
    assert T <= cfg['block_size']

    R = B * T
    tr, R_pad = _row_tiling(R)
    tv, _ = _lm_head_tiling(V)

    def pad_rows(a):
        return a if a.shape[0] == R_pad else jnp.pad(a, ((0, R_pad - a.shape[0]), (0, 0)))

    tok_emb = jnp.take(params['wte'], idx, axis=0)               # (B, T, C)  glue
    pos_emb = params['wpe'][:T][None, :, :]                      # (1, T, C)  glue
    # dropout(p=0) == identity; residual stream carried bf16 between kernels
    x2d = pad_rows((tok_emb + pos_emb).reshape(R, C).astype(jnp.bfloat16))

    # TODO(synk): keep activations resident across layers (single kernel with
    # double-buffered weight DMA) instead of one pallas_call chain per layer.
    for layer in params['layers']:
        (ln1_w, ln1_b, w_qkv, b_qkv, w_ao, b_ao,
         ln2_w, ln2_b, w_fc, b_fc, w_pr, b_pr) = layer

        qkv = run_ln_qkv(x2d, ln1_w, ln1_b, w_qkv, b_qkv, tr)    # (R_pad, 3Hq) bf16

        # ONE packed transpose instead of three per-tensor reshape/transpose chains
        qkv = qkv[:R].reshape(B, T, 3, H, hd)
        qkv = jnp.transpose(qkv, (2, 0, 3, 1, 4))                # (3, B, H, T, hd)
        q = qkv[0].reshape(B * H, T, hd)
        k = qkv[1].reshape(B * H, T, hd)
        v = qkv[2].reshape(B * H, T, hd)

        y = run_flash_attention(q, k, v)                         # (B*H, T, hd) bf16
        y2d = jnp.transpose(y.reshape(B, H, T, hd), (0, 2, 1, 3)).reshape(R, Hq)

        # attn projection + residual + LN2 + MLP + residual (fused, Fd-tiled)
        x2d = run_proj_mlp(x2d, pad_rows(y2d), w_ao, b_ao, ln2_w, ln2_b,
                           w_fc, b_fc, w_pr, b_pr, tr)           # (R_pad, C) bf16

    x_last = x2d[:R].reshape(B, T, C)[:, -1, :]                  # (B, C) bf16
    logits = run_lm_head(x_last, params['lnf_w'], params['lnf_b'],
                         params['wte_t_pad'], tv)                # (B, V_pad) f32
    return logits[:, :V][:, None, :]                             # (B, 1, V); loss=None
    # TODO(synk): targets!=None cross-entropy branch and wm_mask decay matrices
    # (disabled in the default config: wm_mask=False) are not implemented.


# ----------------------------------------------------------------------------
# pure-JAX reference (f32 math on the same bf16-stored weights) for sanity check
# ----------------------------------------------------------------------------
def gpt_forward_ref(idx, params, cfg):
    B, T = idx.shape
    H = cfg['n_head']
    V = cfg['vocab_size']
    x = jnp.take(params['wte'], idx, axis=0) + params['wpe'][:T][None]
    for (ln1w, ln1b, wqkv, bqkv, wao, bao,
         ln2w, ln2b, wfc, bfc, wpr, bpr) in params['layers']:
        wqkv = wqkv.astype(jnp.float32)
        wao = wao.astype(jnp.float32)
        wfc = wfc.astype(jnp.float32)
        wpr = wpr.astype(jnp.float32)
        h = _layernorm(x, ln1w, ln1b)
        qkv = jnp.einsum('btc,co->bto', h, wqkv) + bqkv
        Hq = wqkv.shape[1] // 3
        hd = Hq // H
        q, k, v = qkv[..., :Hq], qkv[..., Hq:2 * Hq], qkv[..., 2 * Hq:]
        q = q.reshape(B, T, H, hd).transpose(0, 2, 1, 3)
        k = k.reshape(B, T, H, hd).transpose(0, 2, 1, 3)
        v = v.reshape(B, T, H, hd).transpose(0, 2, 1, 3)
        att = jnp.einsum('bhtd,bhsd->bhts', q, k) / math.sqrt(hd)
        mask = jnp.tril(jnp.ones((T, T), bool))
        att = jnp.where(mask[None, None], att, -jnp.inf)
        att = jax.nn.softmax(att, axis=-1)
        y = jnp.einsum('bhts,bhsd->bhtd', att, v)
        y = y.transpose(0, 2, 1, 3).reshape(B, T, Hq)
        x = x + jnp.einsum('bth,hc->btc', y, wao) + bao
        h = _layernorm(x, ln2w, ln2b)
        f = _gelu_exact(jnp.einsum('btc,cf->btf', h, wfc) + bfc)
        x = x + jnp.einsum('btf,fc->btc', f, wpr) + bpr
    xl = _layernorm(x[:, -1, :], params['lnf_w'], params['lnf_b'])
    w_head = params['wte_t_pad'][:, :V].astype(jnp.float32)
    return (xl @ w_head)[:, None, :]


# ----------------------------------------------------------------------------
if __name__ == "__main__":
    cfg = dict(
        block_size=16,
        vocab_size=128,
        n_layer=2,
        n_head=2,
        n_embd=32,
        head_size_qkv=32,
        ffw_dim=64,
    )

    key = jax.random.PRNGKey(0)
    k_params, k_idx = jax.random.split(key)
    params = init_params(k_params, cfg)

    B, T = 2, 8
    idx = jax.random.randint(k_idx, (B, T), 0, cfg['vocab_size'], dtype=jnp.int32)

    logits = jax.block_until_ready(gpt_forward_pallas(idx, params, cfg))
    assert logits.shape == (B, 1, cfg['vocab_size'])

    ref = jax.block_until_ready(gpt_forward_ref(idx, params, cfg))
    err = float(jnp.max(jnp.abs(logits - ref)))
    assert err < 3e-2, f"Pallas output mismatch vs reference (max abs err {err})"

    print("KERNEL_OK")
</pallas_src>

<mosaic_0001>
module attributes {stable_mosaic.version = 11 : i64} {
  func.func @ln_qkv_kernel(%arg0: i32, %arg1: memref<8x32xbf16, #tpu.memory_space<vmem>>, %arg2: memref<1x32xf32, #tpu.memory_space<vmem>>, %arg3: memref<1x32xf32, #tpu.memory_space<vmem>>, %arg4: memref<32x96xbf16, #tpu.memory_space<vmem>>, %arg5: memref<1x96xf32, #tpu.memory_space<vmem>>, %arg6: memref<8x96xbf16, #tpu.memory_space<vmem>>) attributes {dimension_semantics = [#tpu.dimension_semantics<parallel>], iteration_bounds = array<i64: 2>, scalar_prefetch = 0 : i64, scratch_operands = 0 : i64, tpu.core_type = #tpu.core_type<tc>, window_params = [{transform_indices = @transform_0, window_bounds = array<i64: 8, 32>}, {pipeline_mode = #tpu.pipeline_mode<synchronous>, transform_indices = @transform_1, window_bounds = array<i64: 1, 32>}, {pipeline_mode = #tpu.pipeline_mode<synchronous>, transform_indices = @transform_2, window_bounds = array<i64: 1, 32>}, {pipeline_mode = #tpu.pipeline_mode<synchronous>, transform_indices = @transform_3, window_bounds = array<i64: 32, 96>}, {pipeline_mode = #tpu.pipeline_mode<synchronous>, transform_indices = @transform_4, window_bounds = array<i64: 1, 96>}, {transform_indices = @transform_5, window_bounds = array<i64: 8, 96>}]} {
    %c0 = arith.constant 0 : index
    %c0_0 = arith.constant 0 : index
    %0 = vector.load %arg1[%c0, %c0_0] : memref<8x32xbf16, #tpu.memory_space<vmem>>, vector<8x32xbf16>
    %c0_1 = arith.constant 0 : index
    %c0_2 = arith.constant 0 : index
    %1 = vector.load %arg2[%c0_1, %c0_2] : memref<1x32xf32, #tpu.memory_space<vmem>>, vector<1x32xf32>
    %c0_3 = arith.constant 0 : index
    %c0_4 = arith.constant 0 : index
    %2 = vector.load %arg3[%c0_3, %c0_4] : memref<1x32xf32, #tpu.memory_space<vmem>>, vector<1x32xf32>
    %3 = arith.extf %0 : vector<8x32xbf16> to vector<8x32xf32>
    %cst = arith.constant dense<0.000000e+00> : vector<8xf32>
    %4 = vector.multi_reduction <add>, %3, %cst [1] : vector<8x32xf32> to vector<8xf32>
    %5 = vector.shape_cast %4 : vector<8xf32> to vector<8x1xf32>
    %cst_5 = arith.constant 3.200000e+01 : f32
    %6 = vector.broadcast %cst_5 : f32 to vector<8x1xf32>
    %7 = arith.divf %5, %6 : vector<8x1xf32>
    %8 = vector.broadcast %7 : vector<8x1xf32> to vector<8x32xf32>
    %9 = arith.subf %3, %8 : vector<8x32xf32>
    %10 = arith.mulf %9, %9 : vector<8x32xf32>
    %cst_6 = arith.constant dense<0.000000e+00> : vector<8xf32>
    %11 = vector.multi_reduction <add>, %10, %cst_6 [1] : vector<8x32xf32> to vector<8xf32>
    %12 = vector.shape_cast %11 : vector<8xf32> to vector<8x1xf32>
    %cst_7 = arith.constant 3.200000e+01 : f32
    %13 = vector.broadcast %cst_7 : f32 to vector<8x1xf32>
    %14 = arith.divf %12, %13 : vector<8x1xf32>
    %cst_8 = arith.constant 9.99999974E-6 : f32
    %15 = vector.broadcast %cst_8 : f32 to vector<8x1xf32>
    %16 = arith.addf %14, %15 : vector<8x1xf32>
    %17 = math.rsqrt %16 : vector<8x1xf32>
    %18 = vector.broadcast %17 : vector<8x1xf32> to vector<8x32xf32>
    %19 = arith.mulf %9, %18 : vector<8x32xf32>
    %20 = vector.broadcast %1 : vector<1x32xf32> to vector<8x32xf32>
    %21 = arith.mulf %19, %20 : vector<8x32xf32>
    %22 = vector.broadcast %2 : vector<1x32xf32> to vector<8x32xf32>
    %23 = arith.addf %21, %22 : vector<8x32xf32>
    %24 = arith.truncf %23 : vector<8x32xf32> to vector<8x32xbf16>
    %c0_9 = arith.constant 0 : index
    %c0_10 = arith.constant 0 : index
    %25 = vector.load %arg4[%c0_9, %c0_10] : memref<32x96xbf16, #tpu.memory_space<vmem>>, vector<32x96xbf16>
    %cst_11 = arith.constant dense<0.000000e+00> : vector<8x96xf32>
    %26 = tpu.matmul %24, %25, %cst_11 {dimension_numbers = #tpu.dot_dimension_numbers<[1], [0], [0], [1], [0, 0, 1, 1], [], []>} : vector<8x32xbf16>, vector<32x96xbf16>, vector<8x96xf32> -> vector<8x96xf32>
    %c0_12 = arith.constant 0 : index
    %c0_13 = arith.constant 0 : index
    %27 = vector.load %arg5[%c0_12, %c0_13] : memref<1x96xf32, #tpu.memory_space<vmem>>, vector<1x96xf32>
    %28 = vector.broadcast %27 : vector<1x96xf32> to vector<8x96xf32>
    %29 = arith.addf %26, %28 : vector<8x96xf32>
    %30 = arith.truncf %29 : vector<8x96xf32> to vector<8x96xbf16>
    %c0_14 = arith.constant 0 : index
    %c0_15 = arith.constant 0 : index
    %31 = vector.load %arg6[%c0_14, %c0_15] : memref<8x96xbf16, #tpu.memory_space<vmem>>, vector<8x96xbf16>
    tpu.vector_store %arg6[%c0_14, %c0_15], %30 {strides = array<i32>} : memref<8x96xbf16, #tpu.memory_space<vmem>>, vector<8x96xbf16>,
    return
  }
  func.func @transform_0(%arg0: i32) -> (i32, i32) {
    %c0_i32 = arith.constant 0 : i32
    %c0_i32_0 = arith.constant 0 : i32
    return %arg0, %c0_i32 : i32, i32
  }
  func.func @transform_1(%arg0: i32) -> (i32, i32) {
    %c0_i32 = arith.constant 0 : i32
    %c0_i32_0 = arith.constant 0 : i32
    %c0_i32_1 = arith.constant 0 : i32
    return %c0_i32, %c0_i32_0 : i32, i32
  }
  func.func @transform_2(%arg0: i32) -> (i32, i32) {
    %c0_i32 = arith.constant 0 : i32
    %c0_i32_0 = arith.constant 0 : i32
    %c0_i32_1 = arith.constant 0 : i32
    return %c0_i32, %c0_i32_0 : i32, i32
  }
  func.func @transform_3(%arg0: i32) -> (i32, i32) {
    %c0_i32 = arith.constant 0 : i32
    %c0_i32_0 = arith.constant 0 : i32
    %c0_i32_1 = arith.constant 0 : i32
    return %c0_i32, %c0_i32_0 : i32, i32
  }
  func.func @transform_4(%arg0: i32) -> (i32, i32) {
    %c0_i32 = arith.constant 0 : i32
    %c0_i32_0 = arith.constant 0 : i32
    %c0_i32_1 = arith.constant 0 : i32
    return %c0_i32, %c0_i32_0 : i32, i32
  }
  func.func @transform_5(%arg0: i32) -> (i32, i32) {
    %c0_i32 = arith.constant 0 : i32
    %c0_i32_0 = arith.constant 0 : i32
    return %arg0, %c0_i32 : i32, i32
  }
}

</mosaic_0001>

<bundles_post_ra>
// kernel: tpu_custom_call.1
= control target key start
LH: loop header
LB: loop body
LE: loop exit
PB: predicated region body
PF: predicated region fallthrough
CT: control target
= control target key end

     0   :  { %10 = vsyncpa [#allocation3], 0  ;;  %s916_s0 = inlined_call_operand.hbm [shape: bf16[16,32], index: 0, kind: input, shape index: {}]   ;;  %s917_s1 = inlined_call_operand.hbm [shape: f32[1,32], index: 1, kind: input, shape index: {}]   ;;  %s918_s2 = inlined_call_operand.vmem [shape: f32[1,32], index: 2, kind: input, shape index: {}]   ;;  %s919_s3 = inlined_call_operand.hbm [shape: bf16[32,96], index: 3, kind: input, shape index: {}]   ;;  %s920_s4 = inlined_call_operand.vmem [shape: f32[1,96], index: 4, kind: input, shape index: {}]   ;;  %s921_s5 = inlined_call_operand.hbm [shape: bf16[16,96], index: 5, kind: output, shape index: {}]  }
   0x1   :  { %12 = vsyncpa [#allocation3 + $0x1], 0 }
   0x2   :  { %13 = vsyncpa [#allocation6], 0 }
   0x3   :  { %14 = vsyncpa [#allocation4], 0 }
   0x4   :  { %16 = vsyncpa [#allocation4 + $0x1], 0  ;;  %s762_s18 = smov 0   ;;  %s764_s19 = smov 0  }
   0x5   :  { %s766_s20 = smov 0   ;;  %s768_s21 = smov 0  }
   0x6 LB: > { %s783_s22 = sadd.s32 4294967295, %s725_s21   ;;  %s461_s23 = sadd.s32 4294967294, %s725_s21   ;;  %s725_s21 = sphi %s768_s21, %s931_s21   ;;  %s721_s20 = sphi %s766_s20, %s930_s20   ;;  %s717_s19 = sphi %s764_s19, %s929_s19   ;;  %s713_s18 = sphi %s762_s18, %s928_s18  }
   0x7   : > { %p42_p0 = scmp.ne.s32.totalorder %s717_s19, %s713_s18  ;;  %p43_p1 = scmp.eq.s32.totalorder %s783_s22, 0 }
   0x8   : > { %p150_p2 = scmp.eq.s32.totalorder %s783_s22, 1  ;;  %p156_p3 = scmp.eq.s32.totalorder %s461_s23, 1 }
   0x9   : > { %p792_p4 = por %p43_p1, %p42_p0  ;;  %p462_p5 = scmp.ge.s32.totalorder %s725_s21, 1 }
   0xa   : > { %p797_p6 = por %p156_p3, %p42_p0  ;;  %p163_p7 = scmp.lt.s32.totalorder %s725_s21, 3 }
   0xb   : > { %s175_s28 = sshll.u32 %s917_s1, 4  ;;  %s727_s30 = smov [#allocation5]   ;;  %s176_s28 = int_to_ptr.hbm [resolvable:$true] %s175_s28 }
   0xc   : > { %p805_p8 = pnand %p462_p5, %p163_p7  ;;  %s177_s6 = sshll.u32 %s727_s30, 4  ;;  %s178_s6 = int_to_ptr.vmem [resolvable:$true] %s177_s6 }
   0xd   : > { %s189_s9 = sshll.u32 %s919_s3, 4  ;;  %s728_s10 = smov [#allocation7]   ;;  %s190_s9 = int_to_ptr.hbm [resolvable:$true] %s189_s9 }
   0xe   : > { %p500_p10 = pneg %p805_p8  ;;  %s191_s11 = sshll.u32 %s728_s10, 4  ;;  %s192_s11 = int_to_ptr.vmem [resolvable:$true] %s191_s11 }
   0xf   : > { %s729_s12 = smov 64   ;;  %s730_s13 = smov 4  }
  0x10   : > { %p501_p11 = pnand %p500_p10, %p43_p1  ;;  %s818_s14 = sadd.s32 1, %s725_s21  }
  0x11   : > { %s26_s15 = ssub.s32 %s725_s21, %s818_s14  ;;  %s29_s16 = sadd.s32 1, %s721_s20 }
  0x12   : > { %503 = dma.hbm_to_vmem [thread:$0]  (!%p501_p11), %s176_s28, 16, %s178_s6, [#allocation6]  }
  0x13   : > { %506 = dma.hbm_to_vmem [thread:$0]  (!%p501_p11), %s190_s9, 256, %s192_s11, [#allocation6], %s729_s12, %s729_s12, %s730_s13  }
  0x14   : > { %p27_p12 = scmp.eq.s32.totalorder %s26_s15, 0  ;;  %p36_p13 = scmp.ne.s32.totalorder %s721_s20, %s717_s19 }
  0x15   : > { %p37_p0 = scmp.eq.s32.totalorder %s725_s21, 0  ;;  %p517_p7 = scmp.lt.s32.totalorder %s725_s21, 2 }
  0x16   : > { %s827_s17 = scalar_select %p27_p12, %s721_s20, %s29_s16  }
  0x17   : > { %p38_p3 = por %p37_p0, %p36_p13  ;;  %p831_p5 = por %p150_p2, %p36_p13 }
  0x18   : > { %s208_s26 = sand.u32 1, %s721_s20   ;;  %s467_s28 = sshll.u32 %s725_s21, 2 }
  0x19   : > { %s466_s27 = sshll.u32 %s208_s26, 2  ;;  %s216_s7 = scalar_lea.hbm %s916_s0, %s467_s28 }
  0x1a   : > { %s212_s8 = scalar_lea.vmem [#allocation2], %s466_s27  ;;  %s218_s10 = sshll.u32 %s216_s7, 4  ;;  %s219_s10 = int_to_ptr.hbm [resolvable:$true] %s218_s10 }
  0x1b   : > { %s220_s9 = sshll.u32 %s212_s8, 4  ;;  %p841_p10 = pnand %p517_p7, %p38_p3  ;;  %s221_s9 = int_to_ptr.vmem [resolvable:$true] %s220_s9 }
  0x1c   : > { %s209_s12 = scalar_lea.sflag [#allocation3], %s208_s26  ;;  %s625_s13 = sshra.s32 %s219_s10, 4  ;;  %s626_s13 = int_to_ptr.hbm [resolvable:$true] %s625_s13 }
  0x1d   : > { %s627_s15 = scalar_lea.hbm %s626_s13, 4  ;;  %p629_p11 = pneg %p841_p10 }
  0x1e   : > { %p628_p2 = scmp.ne.s32.totalorder %s626_s13, %s627_s15  ;;  %s632_s28 = scalar_lea.hbm %s916_s0, 8 }
  0x1f   : > { %p633_p0 = scmp.lt.s32.totalorder %s626_s13, %s916_s0  ;;  %p634_p3 = scmp.lt.s32.totalorder %s632_s28, %s627_s15 }
  0x20   : > { %p630_p12 = pnand %p629_p11, %p628_p2 }
  0x21   : > { %p635_p7 = por %p634_p3, %p633_p0 }
  0x22   : > { %p631_p13 = pneg %p630_p12 }
  0x24   : > { %p636_p9 = pnand %p635_p7, %p631_p13 }
  0x26   : > { %639 = shalt.err (!%p636_p9)
}
  0x27   : > { %510 = dma.hbm_to_vmem [thread:$0]  (!%p841_p10), %s219_s10, 64, %s221_s9, %s209_s12  }
  0x28   : > { %229 = sbr.rel (%p805_p8) target bundleno = 455 (0x1c7), region = 40  ;;  %s858_s26 = sand.u32 (!%p805_p8), 1, %s717_s19  }
  0x29   : > { %s469_s7 = sshll.u32 (!%p805_p8), %s858_s26, 2  ;;  %s232_s8 = scalar_lea.sflag (!%p805_p8), [#allocation3], %s858_s26 }
  0x2a   : > { %s235_s13 = scalar_lea.vmem (!%p805_p8), [#allocation2], %s469_s7 }
  0x2d   : > { %700 = dma.done.wait (%p792_p4), %s232_s8, 64  }
  0x2e   : > { %702 = vsyncadd (%p792_p4), %s232_s8, 4294967232 }
  0x2f   : > { %704 = dma.done.wait (%p43_p1), [#allocation6], 272  }
  0x30   : > { %706 = vsyncadd (%p43_p1), [#allocation6], 4294967024  ;;  %vm278_vm0 = vcmask 261120   ;;  %v274_v0 = vld [vmem:[%s235_s13] sm:$0xf]  ;;  %v731_v3 = vmov 32.0  }
  0x31   : > { %v277_v1 = vunpack.c.l.bf16 %v274_v0  ;;  %561 = vrcp.f32 %v731_v3  ;;  %v487_v15 = vld [vmem:[#allocation7 + $0x8] sm:$0xff]  ;;  %v486_v16 = vld [vmem:[#allocation7] sm:$0xff]  ;;  %v558_v26 = vld [vmem:[#allocation5] ss:$0 sm:$0xff]  ;;  %s483_s9 = sshll.u32 %s783_s22, 2  ;;  %s272_s27 = scalar_lea.vmem [#allocation8], %s469_s7 }
  0x32   : > { %346 = vmatpush.bf16.msra.mxu0 %v487_v15  ;;  %v559_v29 = vld [vmem:[%s918_s2] ss:$0 sm:$0xff]  ;;  %s367_s16 = scalar_lea.hbm %s921_s5, %s483_s9  ;;  %s369_s28 = sshll.u32 %s272_s27, 4  ;;  %vm354_vm5 = vcmask 781312   ;;  %s370_s28 = int_to_ptr.vmem [resolvable:$true] %s369_s28 }
  0x33   : > { %v279_v2 = vsel %vm278_vm0, %v277_v1, 0.0  ;;  %v560_v33 = vld [vmem:[%s920_s4] ss:$0 sm:$0xff]  ;;  %s371_s30 = sshll.u32 %s367_s16, 4  ;;  %s357_s22 = scalar_lea.sflag [#allocation4], %s858_s26  ;;  %s372_s30 = int_to_ptr.hbm [resolvable:$true] %s371_s30 }
  0x34   : > { %280 = vadd.xlane.f32.xlu0 %v279_v2  ;;  %s669_s6 = sshra.s32 %s372_s30, 4  ;;  %s675_s7 = scalar_lea.hbm %s921_s5, 8  ;;  %s670_s6 = int_to_ptr.hbm [resolvable:$true] %s669_s6 }
  0x35   : > { %s671_s8 = scalar_lea.hbm %s670_s6, 4  ;;  %p676_p9 = scmp.lt.s32.totalorder %s670_s6, %s921_s5 }
  0x36   : > { %347 = vmatpush.bf16.msra.mxu0 %v486_v16  ;;  %p672_p1 = scmp.ne.s32.totalorder %s670_s6, %s671_s8  ;;  %p677_p10 = scmp.lt.s32.totalorder %s675_s7, %s671_s8 }
  0x37   : > { %v562_v4 = vpop.eup %561 }
  0x38   : > { %v283_v5 = vmul.f32 32.0, %v562_v4  ;;  %vm287_vm1 = vweird.f32 %v562_v4  ;;  %p673_p4 = pnand %p672_p1, %p831_p5  ;;  %p678_p2 = por %p677_p10, %p676_p9 }
  0x3a   : > { %v284_v6 = vsub.f32 1.0, %v283_v5  ;;  %p674_p8 = pneg %p673_p4 }
  0x3c   : > { %v285_v7 = vmul.f32 %v562_v4, %v284_v6  ;;  %p679_p11 = pnand %p678_p2, %p674_p8 }
  0x3e   : > { %v286_v8 = vadd.f32 %v562_v4, %v285_v7 }
  0x40   : > { %v288_v9 = vsel %vm287_vm1, %v562_v4, %v286_v8 }
  0xa7   : > { %v281_v10 = vpop.xlane.xlu0 %280 }
  0xa8   : > { %v289_v11 = vmul.f32 %v288_v9, %v281_v10 }
  0xaa   : > { %v290_v12 = vsub.f32 %v277_v1, %v289_v11 }
  0xac   : > { %v291_v13 = vmul.f32 %v290_v12, %v290_v12 }
  0xae   : > { %v292_v14 = vsel %vm278_vm0, %v291_v13, 0.0 }
  0xaf   : > { %293 = vadd.xlane.f32.xlu0 %v292_v14 }
 0x122   : > { %v294_v17 = vpop.xlane.xlu0 %293 }
 0x123   : > { %v295_v18 = vmul.f32 %v294_v17, %v288_v9 }
 0x125   : > { %v296_v19 = vadd.f32 1e-05, %v295_v18 }
 0x127   : > { %563 = vrsqrt.f32 %v296_v19  ;;  %vm303_vm3 = vweird.f32 %v296_v19 }
 0x12d   : > { %v564_v20 = vpop.eup %563 }
 0x12e   : > { %v298_v21 = vmul.f32 %v564_v20, %v296_v19  ;;  %vm304_vm2 = vweird.f32 %v564_v20 }
 0x12f   : > { %vm305_vm4 = vmor %vm303_vm3, %vm304_vm2 }
 0x130   : > { %v299_v22 = vmul.f32 %v564_v20, %v298_v21 }
 0x132   : > { %v300_v23 = vmul.f32 0.5, %v299_v22 }
 0x134   : > { %v301_v24 = vsub.f32 1.5, %v300_v23 }
 0x136   : > { %v302_v25 = vmul.f32 %v564_v20, %v301_v24 }
 0x138   : > { %v306_v27 = vsel %vm305_vm4, %v564_v20, %v302_v25 }
 0x139   : > { %v307_v28 = vmul.f32 %v306_v27, %v290_v12 }
 0x13b   : > { %v311_v30 = vmul.f32 %v558_v26, %v307_v28 }
 0x13d   : > { %v315_v31 = vadd.f32 %v559_v29, %v311_v30 }
 0x13f   : > { %v316_v32 = vpack.c.bf16 %v315_v31, %v315_v31 }
 0x141   : > { %481 = vmatmul.msk.bf16.vlgmr.msra.gmra.mxu0 %vm278_vm0, %v316_v32 }
 0x1be   : > { %v349_v34 = vpop.f32.mrf.mxu0 }
 0x1bf   : > { %v350_v35 = vadd.f32 %v560_v33, %v349_v34 }
 0x1c1   : > { %v353_v36 = vpack.c.bf16 %v350_v35, %v350_v35 }
 0x1c3   : > { %355 = vst.msk [vmem:[%s272_s27] sm:$0xf] %vm354_vm5, %v353_v36 }
 0x1c4   : > { %682 = shalt.err (!%p679_p11)
}
 0x1c5   : > { %498 = dma.vmem_to_hbm [thread:$0]  (%p831_p5), %s370_s28, 64, %s372_s30, %s357_s22  }
 0x1c6   : > { %v351_v37 = vpop.f32.mrf.mxu0 }
 0x1c7 PF: > { %s383_s26 = sand.u32 1, %s713_s18   ;;  %p927_p12 = scmp.ge.s32.totalorder %s725_s21, 2 }
 0x1c8   : > { %s384_s10 = scalar_lea.sflag [#allocation4], %s383_s26 }
 0x1c9   : > { %p512_p13 = pnand %p927_p12, %p797_p6 }
 0x1cb   : > { %p513_p0 = pneg %p512_p13 }
 0x1cd   : > { %708 = dma.done.wait (%p513_p0), %s384_s10, 64  }
 0x1ce   : > { %710 = vsyncadd (%p513_p0), %s384_s10, 4294967232  ;;  %p19_p3 = scmp.ge.s32.totalorder %s818_s14, 4   ;;  %s928_s18 = smov %s717_s19 }
 0x1cf   : > { %s929_s19 = smov %s721_s20  ;;  %s930_s20 = smov %s827_s17 }
 0x1d0   : > { %s931_s21 = smov %s818_s14  ;;  %21 = sbr.rel (!%p19_p3) target bundleno = 6 (0x6), region = 93 }
 0x1d5   :  { %390 = vsyncpa [#allocation3], 1 }
 0x1d6   :  { %392 = vsyncpa [#allocation3 + $0x1], 1 }
 0x1d7   :  { %393 = vsyncpa [#allocation6], 1 }
 0x1d8   :  { %394 = vsyncpa [#allocation4], 1 }
 0x1d9   :  { %396 = vsyncpa [#allocation4 + $0x1], 1 }

</bundles_post_ra>
